<compile_context>
chip_gen: v5e
topology: v5e:2x2
jax: 0.10.0
libtpu: 0.0.40
codegen_flags: <defaults>
</compile_context>

<pallas_src>
import functools
import math

import numpy as np
import jax
import jax.numpy as jnp
from jax import lax
from jax.experimental import pallas as pl
from jax.experimental.pallas import tpu as pltpu

HALF_LOG_2PI = float(0.5 * np.log(2.0 * np.pi))


def _round_up(x, m):
    return ((x + m - 1) // m) * m


def _mlp_layer_kernel(x_ref, wmu_ref, wro_ref, epsw_ref,
                      bmu_ref, bro_ref, epsb_ref,
                      out_ref, lpw_ref, lqw_ref,
                      *, n_in, n_out, tk, tn, needs_mask,
                      a_hi, a_lo, c_hi, c_lo):
    j = pl.program_id(0)          # n_out tile  (parallel)
    k = pl.program_id(1)          # n_in tile   (reduction, innermost)

    def softplus(v):
        # Numerically stable: exp argument is always <= 0, no overflow.
        return jnp.maximum(v, 0.0) + jnp.log(1.0 + jnp.exp(-jnp.abs(v)))

    def log_mixture(v):
        # log( pi*N(v;0,s1) + (1-pi)*N(v;0,s2) ) in factored log-space:
        # 1 exp + 1 log per element; no -inf when the narrow component underflows.
        v2 = v * v
        return a_hi * v2 + jnp.log(c_hi + c_lo * jnp.exp((a_lo - a_hi) * v2))

    # ---- sample this (k, j) tile of W --------------------------------------
    W_mu = wmu_ref[...]
    eps_W = epsw_ref[...]
    W_sig = softplus(wro_ref[...])
    W = W_mu + W_sig * eps_W

    # ---- per-tile prior / posterior statistics over W ----------------------
    lp_tile = log_mixture(W)
    # log_gaussian(W, W_mu, W_sig):  (W - W_mu) == W_sig * eps_W  =>  0.5*eps^2
    lq_tile = (-HALF_LOG_2PI) - jnp.log(W_sig) - 0.5 * (eps_W * eps_W)
    if needs_mask:
        rows = k * tk + lax.broadcasted_iota(jnp.int32, (tk, tn), 0)
        cols = j * tn + lax.broadcasted_iota(jnp.int32, (tk, tn), 1)
        valid = (rows < n_in) & (cols < n_out)
        lp_tile = jnp.where(valid, lp_tile, 0.0)
        lq_tile = jnp.where(valid, lq_tile, 0.0)
    lp_w = jnp.sum(lp_tile)
    lq_w = jnp.sum(lq_tile)

    # ---- first reduction step of this output tile: bias + accumulator init --
    @pl.when(k == 0)
    def _():
        b_mu = bmu_ref[...]                    # (1, tn)
        eps_b = epsb_ref[...]
        b_sig = softplus(bro_ref[...])
        db = b_sig * eps_b
        b = b_mu + db
        lp_b = log_mixture(b)
        # torch behaviour preserved: softplus(b_ro) is treated as a *log*-sigma here
        lq_b = (-HALF_LOG_2PI) - b_sig - 0.5 * (db * db) * jnp.exp(-2.0 * b_sig)
        if needs_mask:
            cols_b = j * tn + lax.broadcasted_iota(jnp.int32, (1, tn), 1)
            b_valid = cols_b < n_out
            lp_b = jnp.where(b_valid, lp_b, 0.0)
            lq_b = jnp.where(b_valid, lq_b, 0.0)
        out_ref[...] = jnp.broadcast_to(b, out_ref.shape)   # bias row for all batches
        lpw_ref[0, 0] = jnp.sum(lp_b)
        lqw_ref[0, 0] = jnp.sum(lq_b)

    # ---- accumulate matmul partial product and the running reductions ------
    out_ref[...] += jnp.dot(x_ref[...], W, preferred_element_type=jnp.float32)
    lpw_ref[0, 0] += lp_w
    lqw_ref[0, 0] += lq_w


def mlp_layer_forward(x, W_mu, W_ro, b_mu, b_ro, eps_W, eps_b,
                      *, sigma1, sigma2, pi):
    """Returns (output [B, n_out], lpw scalar, lqw scalar)."""
    x = x.astype(jnp.float32)
    B, n_in = x.shape
    n_out = W_mu.shape[1]

    # Lane-dense, tile-aligned padded sizes (last dims multiples of 128).
    tk = min(512, _round_up(n_in, 128))
    tn = min(512, _round_up(n_out, 128))
    n_in_p = _round_up(n_in, tk)
    n_out_p = _round_up(n_out, tn)
    K = n_in_p // tk
    J = n_out_p // tn
    pad_in = n_in_p - n_in
    pad_out = n_out_p - n_out
    needs_mask = (pad_in > 0) or (pad_out > 0)

    def pad_w(a):
        a = a.astype(jnp.float32)
        return jnp.pad(a, ((0, pad_in), (0, pad_out))) if needs_mask else a

    def pad_b(a):
        a = a.astype(jnp.float32)
        if pad_out:
            a = jnp.pad(a, (0, pad_out))
        return a.reshape(1, n_out_p)

    xp = jnp.pad(x, ((0, 0), (0, pad_in))) if pad_in else x

    # Scale-mixture constants, with the flatter component factored out so the
    # remaining exp argument is always <= 0 (no overflow, no log(0)).
    sigma1 = float(sigma1); sigma2 = float(sigma2); pi = float(pi)
    c1 = pi / math.sqrt(2.0 * math.pi * sigma1 ** 2)
    c2 = (1.0 - pi) / math.sqrt(2.0 * math.pi * sigma2 ** 2)
    a1 = -1.0 / (2.0 * sigma1 ** 2)
    a2 = -1.0 / (2.0 * sigma2 ** 2)
    if a1 >= a2:
        a_hi, c_hi, a_lo, c_lo = a1, c1, a2, c2
    else:
        a_hi, c_hi, a_lo, c_lo = a2, c2, a1, c1

    kernel = functools.partial(
        _mlp_layer_kernel, n_in=n_in, n_out=n_out, tk=tk, tn=tn,
        needs_mask=needs_mask, a_hi=a_hi, a_lo=a_lo, c_hi=c_hi, c_lo=c_lo)

    out_p, lpw_p, lqw_p = pl.pallas_call(
        kernel,
        out_shape=(
            jax.ShapeDtypeStruct((B, n_out_p), jnp.float32),
            jax.ShapeDtypeStruct((J, 1), jnp.float32),   # per-J-tile lpw partials
            jax.ShapeDtypeStruct((J, 1), jnp.float32),   # per-J-tile lqw partials
        ),
        grid_spec=pltpu.PrefetchScalarGridSpec(
            num_scalar_prefetch=0,
            grid=(J, K),
            in_specs=[
                pl.BlockSpec((B, tk), lambda j, k: (0, k)),    # X
                pl.BlockSpec((tk, tn), lambda j, k: (k, j)),   # W_mu
                pl.BlockSpec((tk, tn), lambda j, k: (k, j)),   # W_ro
                pl.BlockSpec((tk, tn), lambda j, k: (k, j)),   # eps_W
                pl.BlockSpec((1, tn), lambda j, k: (0, j)),    # b_mu
                pl.BlockSpec((1, tn), lambda j, k: (0, j)),    # b_ro
                pl.BlockSpec((1, tn), lambda j, k: (0, j)),    # eps_b
            ],
            out_specs=(
                pl.BlockSpec((B, tn), lambda j, k: (0, j)),    # lane-dense output
                pl.BlockSpec((1, 1), lambda j, k: (j, 0),
                             memory_space=pltpu.MemorySpace.SMEM),
                pl.BlockSpec((1, 1), lambda j, k: (j, 0),
                             memory_space=pltpu.MemorySpace.SMEM),
            ),
        ),
        compiler_params=pltpu.CompilerParams(
            dimension_semantics=("parallel", "arbitrary"),
            vmem_limit_bytes=32 * 1024 * 1024,
        ),
    )(xp, pad_w(W_mu), pad_w(W_ro), pad_w(eps_W),
      pad_b(b_mu), pad_b(b_ro), pad_b(eps_b))

    out = out_p[:, :n_out] if pad_out else out_p
    return out, jnp.sum(lpw_p), jnp.sum(lqw_p)


def _reference(x, W_mu, W_ro, b_mu, b_ro, eps_W, eps_b, sigma1, sigma2, pi):
    # Verbatim math of the torch module (no simplifications).
    W_sig = jnp.log(1.0 + jnp.exp(W_ro))
    W = W_mu + W_sig * eps_W
    b_sig = jnp.log(1.0 + jnp.exp(b_ro))
    b = b_mu + b_sig * eps_b
    out = x @ W + b[None, :]

    def gaussian(v, s):
        return (1.0 / jnp.sqrt(2.0 * np.pi * s ** 2)) * jnp.exp(-(v ** 2) / (2.0 * s ** 2))

    def smp(v):
        return jnp.log(pi * gaussian(v, sigma1) + (1.0 - pi) * gaussian(v, sigma2))

    lpw = jnp.sum(smp(W)) + jnp.sum(smp(b))
    lq_W = jnp.sum(-HALF_LOG_2PI - jnp.log(jnp.abs(W_sig)) - (W - W_mu) ** 2 / (2 * W_sig ** 2))
    lq_b = jnp.sum(-HALF_LOG_2PI - b_sig - (b - b_mu) ** 2 / (2 * jnp.exp(b_sig) ** 2))
    return out, lpw, lq_W + lq_b


if __name__ == "__main__":
    # small shapes consistent with the module's forward: X [B, n_input]
    B, n_input, n_output = 8, 32, 16
    sigma_prior, sigma1, sigma2, pi = 0.1, 1.0, 0.0025, 0.5

    key = jax.random.PRNGKey(0)
    k_wmu, k_bmu, k_x, k_ew, k_eb = jax.random.split(key, 5)

    # deterministic "checkpoint": matches the torch init distributions
    W_mu = 0.1 * jax.random.normal(k_wmu, (n_input, n_output), jnp.float32)
    b_mu = 0.1 * jax.random.normal(k_bmu, (n_output,), jnp.float32)
    W_ro = jnp.full((n_input, n_output), -5.0, jnp.float32)
    b_ro = jnp.full((n_output,), -5.0, jnp.float32)

    x = jax.random.normal(k_x, (B, n_input), jnp.float32)
    # get_random(): eps_W ~ N(0,1), eps_b ~ N(0, sigma_prior)
    eps_W = jax.random.normal(k_ew, (n_input, n_output), jnp.float32)
    eps_b = sigma_prior * jax.random.normal(k_eb, (n_output,), jnp.float32)

    out, lpw, lqw = mlp_layer_forward(x, W_mu, W_ro, b_mu, b_ro, eps_W, eps_b,
                                      sigma1=sigma1, sigma2=sigma2, pi=pi)
    jax.block_until_ready((out, lpw, lqw))

    out_r, lpw_r, lqw_r = _reference(x, W_mu, W_ro, b_mu, b_ro, eps_W, eps_b,
                                     sigma1, sigma2, pi)
    np.testing.assert_allclose(np.asarray(out), np.asarray(out_r), rtol=1e-5, atol=1e-5)
    np.testing.assert_allclose(float(lpw), float(lpw_r), rtol=1e-4, atol=1e-3)
    np.testing.assert_allclose(float(lqw), float(lqw_r), rtol=1e-4, atol=1e-3)

    print("KERNEL_OK")
</pallas_src>

<mosaic_0001>
module attributes {stable_mosaic.version = 11 : i64} {
  func.func @_mlp_layer_kernel(%arg0: i32, %arg1: i32, %arg2: memref<8x128xf32, #tpu.memory_space<vmem>>, %arg3: memref<128x128xf32, #tpu.memory_space<vmem>>, %arg4: memref<128x128xf32, #tpu.memory_space<vmem>>, %arg5: memref<128x128xf32, #tpu.memory_space<vmem>>, %arg6: memref<1x128xf32, #tpu.memory_space<vmem>>, %arg7: memref<1x128xf32, #tpu.memory_space<vmem>>, %arg8: memref<1x128xf32, #tpu.memory_space<vmem>>, %arg9: memref<8x128xf32, #tpu.memory_space<vmem>>, %arg10: memref<1x1xf32, #tpu.memory_space<smem>>, %arg11: memref<1x1xf32, #tpu.memory_space<smem>>) attributes {dimension_semantics = [#tpu.dimension_semantics<parallel>, #tpu.dimension_semantics<arbitrary>], iteration_bounds = array<i64: 1, 1>, scalar_prefetch = 0 : i64, scratch_operands = 0 : i64, tpu.core_type = #tpu.core_type<tc>, window_params = [{transform_indices = @transform_0, window_bounds = array<i64: 8, 128>}, {transform_indices = @transform_1, window_bounds = array<i64: 128, 128>}, {transform_indices = @transform_2, window_bounds = array<i64: 128, 128>}, {transform_indices = @transform_3, window_bounds = array<i64: 128, 128>}, {transform_indices = @transform_4, window_bounds = array<i64: 1, 128>}, {transform_indices = @transform_5, window_bounds = array<i64: 1, 128>}, {transform_indices = @transform_6, window_bounds = array<i64: 1, 128>}, {transform_indices = @transform_7, window_bounds = array<i64: 8, 128>}, {transform_indices = @transform_8, window_bounds = array<i64: 1, 1>}, {transform_indices = @transform_9, window_bounds = array<i64: 1, 1>}]} {
    %c0 = arith.constant 0 : index
    %c0_0 = arith.constant 0 : index
    %0 = vector.load %arg3[%c0, %c0_0] : memref<128x128xf32, #tpu.memory_space<vmem>>, vector<128x128xf32>
    %c0_1 = arith.constant 0 : index
    %c0_2 = arith.constant 0 : index
    %1 = vector.load %arg5[%c0_1, %c0_2] : memref<128x128xf32, #tpu.memory_space<vmem>>, vector<128x128xf32>
    %c0_3 = arith.constant 0 : index
    %c0_4 = arith.constant 0 : index
    %2 = vector.load %arg4[%c0_3, %c0_4] : memref<128x128xf32, #tpu.memory_space<vmem>>, vector<128x128xf32>
    %cst = arith.constant 0.000000e+00 : f32
    %3 = vector.broadcast %cst : f32 to vector<128x128xf32>
    %4 = arith.maximumf %2, %3 : vector<128x128xf32>
    %5 = math.absf %2 : vector<128x128xf32>
    %cst_5 = arith.constant 0.000000e+00 : f32
    %6 = vector.broadcast %cst_5 : f32 to vector<128x128xf32>
    %7 = arith.subf %6, %5 : vector<128x128xf32>
    %8 = math.exp %7 : vector<128x128xf32>
    %cst_6 = arith.constant 1.000000e+00 : f32
    %9 = vector.broadcast %cst_6 : f32 to vector<128x128xf32>
    %10 = arith.addf %9, %8 : vector<128x128xf32>
    %11 = math.log %10 : vector<128x128xf32>
    %12 = arith.addf %4, %11 : vector<128x128xf32>
    %13 = arith.mulf %12, %1 : vector<128x128xf32>
    %14 = arith.addf %0, %13 : vector<128x128xf32>
    %15 = arith.mulf %14, %14 : vector<128x128xf32>
    %cst_7 = arith.constant -5.000000e-01 : f32
    %16 = vector.broadcast %cst_7 : f32 to vector<128x128xf32>
    %17 = arith.mulf %16, %15 : vector<128x128xf32>
    %cst_8 = arith.constant -7.999950e+04 : f32
    %18 = vector.broadcast %cst_8 : f32 to vector<128x128xf32>
    %19 = arith.mulf %18, %15 : vector<128x128xf32>
    %20 = math.exp %19 : vector<128x128xf32>
    %cst_9 = arith.constant 79.7884598 : f32
    %21 = vector.broadcast %cst_9 : f32 to vector<128x128xf32>
    %22 = arith.mulf %21, %20 : vector<128x128xf32>
    %cst_10 = arith.constant 0.199471146 : f32
    %23 = vector.broadcast %cst_10 : f32 to vector<128x128xf32>
    %24 = arith.addf %23, %22 : vector<128x128xf32>
    %25 = math.log %24 : vector<128x128xf32>
    %26 = arith.addf %17, %25 : vector<128x128xf32>
    %27 = math.log %12 : vector<128x128xf32>
    %cst_11 = arith.constant -0.918938517 : f32
    %28 = vector.broadcast %cst_11 : f32 to vector<128x128xf32>
    %29 = arith.subf %28, %27 : vector<128x128xf32>
    %30 = arith.mulf %1, %1 : vector<128x128xf32>
    %cst_12 = arith.constant 5.000000e-01 : f32
    %31 = vector.broadcast %cst_12 : f32 to vector<128x128xf32>
    %32 = arith.mulf %31, %30 : vector<128x128xf32>
    %33 = arith.subf %29, %32 : vector<128x128xf32>
    %c128_i32 = arith.constant 128 : i32
    %34 = arith.muli %arg1, %c128_i32 : i32
    %35 = tpu.iota {dimensions = array<i32: 0>} : vector<128x128xi32>
    %36 = vector.broadcast %34 : i32 to vector<128x128xi32>
    %37 = arith.addi %36, %35 : vector<128x128xi32>
    %c128_i32_13 = arith.constant 128 : i32
    %38 = arith.muli %arg0, %c128_i32_13 : i32
    %39 = tpu.iota {dimensions = array<i32: 1>} : vector<128x128xi32>
    %40 = vector.broadcast %38 : i32 to vector<128x128xi32>
    %41 = arith.addi %40, %39 : vector<128x128xi32>
    %c32_i32 = arith.constant 32 : i32
    %42 = vector.broadcast %c32_i32 : i32 to vector<128x128xi32>
    %43 = arith.cmpi slt, %37, %42 : vector<128x128xi32>
    %c16_i32 = arith.constant 16 : i32
    %44 = vector.broadcast %c16_i32 : i32 to vector<128x128xi32>
    %45 = arith.cmpi slt, %41, %44 : vector<128x128xi32>
    %46 = arith.andi %43, %45 : vector<128x128xi1>
    %cst_14 = arith.constant 0.000000e+00 : f32
    %47 = vector.broadcast %cst_14 : f32 to vector<128x128xf32>
    %48 = arith.select %46, %26, %47 : vector<128x128xi1>, vector<128x128xf32>
    %cst_15 = arith.constant 0.000000e+00 : f32
    %49 = vector.broadcast %cst_15 : f32 to vector<128x128xf32>
    %50 = arith.select %46, %33, %49 : vector<128x128xi1>, vector<128x128xf32>
    %51 = vector.shape_cast %48 : vector<128x128xf32> to vector<1x128x128xf32>
    %cst_16 = arith.constant dense<0.000000e+00> : vector<1xf32>
    %52 = vector.multi_reduction <add>, %51, %cst_16 [1, 2] : vector<1x128x128xf32> to vector<1xf32>
    %53 = vector.shape_cast %52 : vector<1xf32> to vector<1x1x1xf32>
    %54 = vector.extract %53[0, 0, 0] : f32 from vector<1x1x1xf32>
    %55 = vector.shape_cast %50 : vector<128x128xf32> to vector<1x128x128xf32>
    %cst_17 = arith.constant dense<0.000000e+00> : vector<1xf32>
    %56 = vector.multi_reduction <add>, %55, %cst_17 [1, 2] : vector<1x128x128xf32> to vector<1xf32>
    %57 = vector.shape_cast %56 : vector<1xf32> to vector<1x1x1xf32>
    %58 = vector.extract %57[0, 0, 0] : f32 from vector<1x1x1xf32>
    %c0_i32 = arith.constant 0 : i32
    %59 = arith.cmpi eq, %arg1, %c0_i32 : i32
    %60 = arith.extui %59 : i1 to i32
    %c0_i32_18 = arith.constant 0 : i32
    %61 = arith.cmpi ne, %60, %c0_i32_18 : i32
    scf.if %61 {
      %c0_34 = arith.constant 0 : index
      %c0_35 = arith.constant 0 : index
      %73 = vector.load %arg6[%c0_34, %c0_35] : memref<1x128xf32, #tpu.memory_space<vmem>>, vector<1x128xf32>
      %c0_36 = arith.constant 0 : index
      %c0_37 = arith.constant 0 : index
      %74 = vector.load %arg8[%c0_36, %c0_37] : memref<1x128xf32, #tpu.memory_space<vmem>>, vector<1x128xf32>
      %c0_38 = arith.constant 0 : index
      %c0_39 = arith.constant 0 : index
      %75 = vector.load %arg7[%c0_38, %c0_39] : memref<1x128xf32, #tpu.memory_space<vmem>>, vector<1x128xf32>
      %cst_40 = arith.constant 0.000000e+00 : f32
      %76 = vector.broadcast %cst_40 : f32 to vector<1x128xf32>
      %77 = arith.maximumf %75, %76 : vector<1x128xf32>
      %78 = math.absf %75 : vector<1x128xf32>
      %cst_41 = arith.constant 0.000000e+00 : f32
      %79 = vector.broadcast %cst_41 : f32 to vector<1x128xf32>
      %80 = arith.subf %79, %78 : vector<1x128xf32>
      %81 = math.exp %80 : vector<1x128xf32>
      %cst_42 = arith.constant 1.000000e+00 : f32
      %82 = vector.broadcast %cst_42 : f32 to vector<1x128xf32>
      %83 = arith.addf %82, %81 : vector<1x128xf32>
      %84 = math.log %83 : vector<1x128xf32>
      %85 = arith.addf %77, %84 : vector<1x128xf32>
      %86 = arith.mulf %85, %74 : vector<1x128xf32>
      %87 = arith.addf %73, %86 : vector<1x128xf32>
      %88 = arith.mulf %87, %87 : vector<1x128xf32>
      %cst_43 = arith.constant -5.000000e-01 : f32
      %89 = vector.broadcast %cst_43 : f32 to vector<1x128xf32>
      %90 = arith.mulf %89, %88 : vector<1x128xf32>
      %cst_44 = arith.constant -7.999950e+04 : f32
      %91 = vector.broadcast %cst_44 : f32 to vector<1x128xf32>
      %92 = arith.mulf %91, %88 : vector<1x128xf32>
      %93 = math.exp %92 : vector<1x128xf32>
      %cst_45 = arith.constant 79.7884598 : f32
      %94 = vector.broadcast %cst_45 : f32 to vector<1x128xf32>
      %95 = arith.mulf %94, %93 : vector<1x128xf32>
      %cst_46 = arith.constant 0.199471146 : f32
      %96 = vector.broadcast %cst_46 : f32 to vector<1x128xf32>
      %97 = arith.addf %96, %95 : vector<1x128xf32>
      %98 = math.log %97 : vector<1x128xf32>
      %99 = arith.addf %90, %98 : vector<1x128xf32>
      %cst_47 = arith.constant -0.918938517 : f32
      %100 = vector.broadcast %cst_47 : f32 to vector<1x128xf32>
      %101 = arith.subf %100, %85 : vector<1x128xf32>
      %102 = arith.mulf %86, %86 : vector<1x128xf32>
      %cst_48 = arith.constant 5.000000e-01 : f32
      %103 = vector.broadcast %cst_48 : f32 to vector<1x128xf32>
      %104 = arith.mulf %103, %102 : vector<1x128xf32>
      %cst_49 = arith.constant -2.000000e+00 : f32
      %105 = vector.broadcast %cst_49 : f32 to vector<1x128xf32>
      %106 = arith.mulf %105, %85 : vector<1x128xf32>
      %107 = math.exp %106 : vector<1x128xf32>
      %108 = arith.mulf %104, %107 : vector<1x128xf32>
      %109 = arith.subf %101, %108 : vector<1x128xf32>
      %c128_i32_50 = arith.constant 128 : i32
      %110 = arith.muli %arg0, %c128_i32_50 : i32
      %111 = tpu.iota {dimensions = array<i32: 1>} : vector<1x128xi32>
      %112 = vector.broadcast %110 : i32 to vector<1x128xi32>
      %113 = arith.addi %112, %111 : vector<1x128xi32>
      %c16_i32_51 = arith.constant 16 : i32
      %114 = vector.broadcast %c16_i32_51 : i32 to vector<1x128xi32>
      %115 = arith.cmpi slt, %113, %114 : vector<1x128xi32>
      %cst_52 = arith.constant 0.000000e+00 : f32
      %116 = vector.broadcast %cst_52 : f32 to vector<1x128xf32>
      %117 = arith.select %115, %99, %116 : vector<1x128xi1>, vector<1x128xf32>
      %cst_53 = arith.constant 0.000000e+00 : f32
      %118 = vector.broadcast %cst_53 : f32 to vector<1x128xf32>
      %119 = arith.select %115, %109, %118 : vector<1x128xi1>, vector<1x128xf32>
      %120 = vector.shape_cast %87 : vector<1x128xf32> to vector<1x128xf32>
      %121 = vector.broadcast %120 : vector<1x128xf32> to vector<8x128xf32>
      %c0_54 = arith.constant 0 : index
      %c0_55 = arith.constant 0 : index
      %122 = vector.load %arg9[%c0_54, %c0_55] : memref<8x128xf32, #tpu.memory_space<vmem>>, vector<8x128xf32>
      tpu.vector_store %arg9[%c0_54, %c0_55], %121 {strides = array<i32>} : memref<8x128xf32, #tpu.memory_space<vmem>>, vector<8x128xf32>,
      %123 = vector.shape_cast %117 : vector<1x128xf32> to vector<1x1x128xf32>
      %cst_56 = arith.constant dense<0.000000e+00> : vector<1xf32>
      %124 = vector.multi_reduction <add>, %123, %cst_56 [1, 2] : vector<1x1x128xf32> to vector<1xf32>
      %125 = vector.shape_cast %124 : vector<1xf32> to vector<1x1x1xf32>
      %126 = vector.extract %125[0, 0, 0] : f32 from vector<1x1x1xf32>
      %c0_57 = arith.constant 0 : index
      %c0_58 = arith.constant 0 : index
      %127 = memref.load %arg10[%c0_57, %c0_58] : memref<1x1xf32, #tpu.memory_space<smem>>
      memref.store %126, %arg10[%c0_57, %c0_58] : memref<1x1xf32, #tpu.memory_space<smem>>
      %128 = vector.shape_cast %119 : vector<1x128xf32> to vector<1x1x128xf32>
      %cst_59 = arith.constant dense<0.000000e+00> : vector<1xf32>
      %129 = vector.multi_reduction <add>, %128, %cst_59 [1, 2] : vector<1x1x128xf32> to vector<1xf32>
      %130 = vector.shape_cast %129 : vector<1xf32> to vector<1x1x1xf32>
      %131 = vector.extract %130[0, 0, 0] : f32 from vector<1x1x1xf32>
      %c0_60 = arith.constant 0 : index
      %c0_61 = arith.constant 0 : index
      %132 = memref.load %arg11[%c0_60, %c0_61] : memref<1x1xf32, #tpu.memory_space<smem>>
      memref.store %131, %arg11[%c0_60, %c0_61] : memref<1x1xf32, #tpu.memory_space<smem>>
    } else {
    }
    %c0_19 = arith.constant 0 : index
    %c0_20 = arith.constant 0 : index
    %62 = vector.load %arg9[%c0_19, %c0_20] : memref<8x128xf32, #tpu.memory_space<vmem>>, vector<8x128xf32>
    %c0_21 = arith.constant 0 : index
    %c0_22 = arith.constant 0 : index
    %63 = vector.load %arg2[%c0_21, %c0_22] : memref<8x128xf32, #tpu.memory_space<vmem>>, vector<8x128xf32>
    %cst_23 = arith.constant dense<0.000000e+00> : vector<8x128xf32>
    %64 = tpu.matmul %63, %14, %cst_23 {dimension_numbers = #tpu.dot_dimension_numbers<[1], [0], [0], [1], [0, 0, 1, 1], [], []>} : vector<8x128xf32>, vector<128x128xf32>, vector<8x128xf32> -> vector<8x128xf32>
    %65 = arith.addf %62, %64 : vector<8x128xf32>
    %c0_24 = arith.constant 0 : index
    %c0_25 = arith.constant 0 : index
    %66 = vector.load %arg9[%c0_24, %c0_25] : memref<8x128xf32, #tpu.memory_space<vmem>>, vector<8x128xf32>
    tpu.vector_store %arg9[%c0_24, %c0_25], %65 {strides = array<i32>} : memref<8x128xf32, #tpu.memory_space<vmem>>, vector<8x128xf32>,
    %c0_26 = arith.constant 0 : index
    %c0_27 = arith.constant 0 : index
    %67 = memref.load %arg10[%c0_26, %c0_27] : memref<1x1xf32, #tpu.memory_space<smem>>
    %68 = arith.addf %67, %54 : f32
    %c0_28 = arith.constant 0 : index
    %c0_29 = arith.constant 0 : index
    %69 = memref.load %arg10[%c0_28, %c0_29] : memref<1x1xf32, #tpu.memory_space<smem>>
    memref.store %68, %arg10[%c0_28, %c0_29] : memref<1x1xf32, #tpu.memory_space<smem>>
    %c0_30 = arith.constant 0 : index
    %c0_31 = arith.constant 0 : index
    %70 = memref.load %arg11[%c0_30, %c0_31] : memref<1x1xf32, #tpu.memory_space<smem>>
    %71 = arith.addf %70, %58 : f32
    %c0_32 = arith.constant 0 : index
    %c0_33 = arith.constant 0 : index
    %72 = memref.load %arg11[%c0_32, %c0_33] : memref<1x1xf32, #tpu.memory_space<smem>>
    memref.store %71, %arg11[%c0_32, %c0_33] : memref<1x1xf32, #tpu.memory_space<smem>>
    return
  }
  func.func @transform_0(%arg0: i32, %arg1: i32) -> (i32, i32) {
    %c0_i32 = arith.constant 0 : i32
    %c0_i32_0 = arith.constant 0 : i32
    return %c0_i32, %arg1 : i32, i32
  }
  func.func @transform_1(%arg0: i32, %arg1: i32) -> (i32, i32) {
    %c0_i32 = arith.constant 0 : i32
    return %arg1, %arg0 : i32, i32
  }
  func.func @transform_2(%arg0: i32, %arg1: i32) -> (i32, i32) {
    %c0_i32 = arith.constant 0 : i32
    return %arg1, %arg0 : i32, i32
  }
  func.func @transform_3(%arg0: i32, %arg1: i32) -> (i32, i32) {
    %c0_i32 = arith.constant 0 : i32
    return %arg1, %arg0 : i32, i32
  }
  func.func @transform_4(%arg0: i32, %arg1: i32) -> (i32, i32) {
    %c0_i32 = arith.constant 0 : i32
    %c0_i32_0 = arith.constant 0 : i32
    return %c0_i32, %arg0 : i32, i32
  }
  func.func @transform_5(%arg0: i32, %arg1: i32) -> (i32, i32) {
    %c0_i32 = arith.constant 0 : i32
    %c0_i32_0 = arith.constant 0 : i32
    return %c0_i32, %arg0 : i32, i32
  }
  func.func @transform_6(%arg0: i32, %arg1: i32) -> (i32, i32) {
    %c0_i32 = arith.constant 0 : i32
    %c0_i32_0 = arith.constant 0 : i32
    return %c0_i32, %arg0 : i32, i32
  }
  func.func @transform_7(%arg0: i32, %arg1: i32) -> (i32, i32) {
    %c0_i32 = arith.constant 0 : i32
    %c0_i32_0 = arith.constant 0 : i32
    return %c0_i32, %arg0 : i32, i32
  }
  func.func @transform_8(%arg0: i32, %arg1: i32) -> (i32, i32) {
    %c0_i32 = arith.constant 0 : i32
    %c0_i32_0 = arith.constant 0 : i32
    return %arg0, %c0_i32 : i32, i32
  }
  func.func @transform_9(%arg0: i32, %arg1: i32) -> (i32, i32) {
    %c0_i32 = arith.constant 0 : i32
    %c0_i32_0 = arith.constant 0 : i32
    return %arg0, %c0_i32 : i32, i32
  }
}

</mosaic_0001>

<bundles_post_ra>
// kernel: tpu_custom_call.1
= control target key start
LH: loop header
LB: loop body
LE: loop exit
PB: predicated region body
PF: predicated region fallthrough
CT: control target
= control target key end

     0   :  { %15 = vsyncpa [#allocation3], 0  ;;  %s1388_s0 = inlined_call_operand.hbm [shape: f32[8,128], index: 0, kind: input, shape index: {}]   ;;  %s1389_s1 = inlined_call_operand.hbm [shape: f32[128,128], index: 1, kind: input, shape index: {}]   ;;  %s1390_s2 = inlined_call_operand.hbm [shape: f32[128,128], index: 2, kind: input, shape index: {}]   ;;  %s1391_s3 = inlined_call_operand.hbm [shape: f32[128,128], index: 3, kind: input, shape index: {}]   ;;  %s1392_s4 = inlined_call_operand.vmem [shape: f32[1,128], index: 4, kind: input, shape index: {}]   ;;  %s1393_s5 = inlined_call_operand.vmem [shape: f32[1,128], index: 5, kind: input, shape index: {}]   ;;  %s1394_s6 = inlined_call_operand.vmem [shape: f32[1,128], index: 6, kind: input, shape index: {}]   ;;  %s1395_s7 = inlined_call_operand.hbm [shape: f32[8,128], index: 7, kind: output, shape index: {0}]   ;;  %s1396_s8 = inlined_call_operand.hbm [shape: f32[1,1], index: 8, kind: output, shape index: {1}]   ;;  %s1397_s9 = inlined_call_operand.hbm [shape: f32[1,1], index: 9, kind: output, shape index: {2}]  }
   0x1   :  { %16 = vsyncpa [#allocation7], 0 }
   0x2   :  { %17 = vsyncpa [#allocation10], 0 }
   0x3   :  { %18 = vsyncpa [#allocation4], 0 }
   0x4   :  { %19 = vsyncpa [#allocation5], 0  ;;  %s36_s11 = sshll.u32 %s1389_s1, 4  ;;  %s37_s11 = int_to_ptr.hbm [resolvable:$true] %s36_s11 }
   0x5   :  { %20 = vsyncpa [#allocation14], 0  ;;  %s1144_s12 = smov [#allocation6]   ;;  %s26_s16 = sshll.u32 %s1388_s0, 4  ;;  %s27_s16 = int_to_ptr.hbm [resolvable:$true] %s26_s16 }
   0x6   :  { %s38_s13 = sshll.u32 %s1144_s12, 4  ;;  %s1145_s17 = smov 128   ;;  %s39_s13 = int_to_ptr.vmem [resolvable:$true] %s38_s13 }
   0x7   :  { %s1146_s18 = smov 8   ;;  %s1147_s19 = smov [#allocation2]  }
   0x8   :  { %44 = dma.hbm_to_vmem [thread:$0]  %s37_s11, 2048, %s39_s13, [#allocation7], %s1145_s17, %s1145_s17, %s1146_s18  }
   0x9   :  { %s28_s20 = sshll.u32 %s1147_s19, 4  ;;  %s49_s23 = sshll.u32 %s1390_s2, 4  ;;  %s29_s20 = int_to_ptr.vmem [resolvable:$true] %s28_s20  ;;  %s50_s23 = int_to_ptr.hbm [resolvable:$true] %s49_s23 }
   0xa   :  { %31 = dma.hbm_to_vmem [thread:$0]  %s27_s16, 128, %s29_s20, [#allocation3]  }
   0xb   :  { %s62_s25 = sshll.u32 %s1391_s3, 4  ;;  %s1148_s26 = smov [#allocation8]   ;;  %s63_s25 = int_to_ptr.hbm [resolvable:$true] %s62_s25 }
   0xc   :  { %s51_s27 = sshll.u32 %s1148_s26, 4  ;;  %s1149_s0 = smov [#allocation9]   ;;  %s52_s27 = int_to_ptr.vmem [resolvable:$true] %s51_s27 }
   0xd   :  { %57 = dma.hbm_to_vmem [thread:$0]  %s50_s23, 2048, %s52_s27, [#allocation7], %s1145_s17, %s1145_s17, %s1146_s18  }
   0xe   :  { %s64_s28 = sshll.u32 %s1149_s0, 4  ;;  %s65_s28 = int_to_ptr.vmem [resolvable:$true] %s64_s28 }
   0xf   :  { %70 = dma.hbm_to_vmem [thread:$0]  %s63_s25, 2048, %s65_s28, [#allocation10], %s1145_s17, %s1145_s17, %s1146_s18  }
  0x10   :  { %1132 = dma.done.wait [#allocation3], 128  }
  0x11   :  { %1133 = vsyncadd [#allocation3], 4294967168 }
  0x12   :  { %1134 = dma.done.wait [#allocation7], 4096  }
  0x13   :  { %1135 = vsyncadd [#allocation7], 4294963200 }
  0x14   :  { %1136 = dma.done.wait [#allocation10], 2048  }
  0x15   :  { %1137 = vsyncadd [#allocation10], 4294965248  ;;  %v732_v0 = vld [vmem:[%s1393_s5] sm:$0x1]  ;;  %v125_v3 = vld [vmem:[#allocation8] sm:$0xff]  ;;  %vm768_vm1 = vcmask 1040384  }
  0x16   :  { %v734_v1 = vand.u32 2147483647, %v732_v0  ;;  %v1218_v4 = vld [vmem:[#allocation8 + $0x8] sm:$0xff]  ;;  %v1220_v5 = vld [vmem:[#allocation8 + $0x10] sm:$0xff]  ;;  %v1222_v6 = vld [vmem:[#allocation8 + $0x18] sm:$0xff]  ;;  %v733_v29 = vmax.f32 %v732_v0, 0.0 }
  0x17   :  { %v157_v7 = vand.u32 2147483647, %v125_v3  ;;  %v158_v9 = vand.u32 2147483647, %v1218_v4  ;;  %v159_v10 = vand.u32 2147483647, %v1220_v5 }
  0x18   :  { %v735_v2 = vsub.f32 0.0, %v734_v1  ;;  %v160_v11 = vand.u32 2147483647, %v1222_v6  ;;  %v731_v33 = vld [vmem:[%s1394_s6] sm:$0x1]  ;;  %v141_v35 = vmax.f32 %v125_v3, 0.0  ;;  %v609_v3 = vlaneseq }
  0x19   :  { %v173_v12 = vsub.f32 0.0, %v157_v7  ;;  %v174_v13 = vsub.f32 0.0, %v158_v9  ;;  %v175_v14 = vsub.f32 0.0, %v159_v10  ;;  %v730_v37 = vld [vmem:[%s1392_s4] sm:$0x1]  ;;  %v142_v38 = vmax.f32 %v1218_v4, 0.0 }
  0x1a   :  { %v736_v8 = vmul.f32 1.442695, %v735_v2  ;;  %v176_v15 = vsub.f32 0.0, %v160_v11  ;;  %v143_v41 = vmax.f32 %v1220_v5, 0.0  ;;  %v1239_v45 = vld [vmem:[#allocation9] sm:$0xff]  ;;  %v144_v46 = vmax.f32 %v1222_v6, 0.0 }
  0x1b   :  { %v189_v16 = vmul.f32 1.442695, %v173_v12  ;;  %v191_v17 = vmul.f32 1.442695, %v174_v13  ;;  %v193_v18 = vmul.f32 1.442695, %v175_v14 }
  0x1c   :  { %890 = vpow2.f32 %v736_v8  ;;  %v195_v19 = vmul.f32 1.442695, %v176_v15  ;;  %v1244_v50 = vld [vmem:[#allocation9 + $0x8] sm:$0xff]  ;;  %v93_v54 = vld [vmem:[#allocation6] sm:$0xff]  ;;  %v1246_v55 = vld [vmem:[#allocation9 + $0x10] sm:$0xff]  ;;  %s1150_s4 = smov [#allocation11]  }
  0x1d   :  { %892 = vpow2.f32 %v189_v16  ;;  %v94_v59 = vld [vmem:[#allocation6 + $0x8] sm:$0xff]  ;;  %v1250_v60 = vld [vmem:[#allocation9 + $0x18] sm:$0xff]  ;;  %v95_v63 = vld [vmem:[#allocation6 + $0x10] sm:$0xff]  ;;  %v1268_v16 = vand.u32 127, %v609_v3  ;;  %s830_s6 = sshll.u32 %s1150_s4, 4  ;;  %s832_s13 = sshll.u32 %s1395_s7, 4  ;;  %s831_s6 = int_to_ptr.vmem [resolvable:$true] %s830_s6  ;;  %s833_s13 = int_to_ptr.hbm [resolvable:$true] %s832_s13 }
  0x1e   :  { %894 = vpow2.f32 %v191_v17  ;;  %v96_v5 = vld [vmem:[#allocation6 + $0x18] sm:$0xff]  ;;  %s841_s16 = sshll.u32 %s1396_s8, 4  ;;  %s850_s22 = sshll.u32 %s1397_s9, 4  ;;  %s842_s16 = int_to_ptr.hbm [resolvable:$true] %s841_s16  ;;  %s851_s22 = int_to_ptr.hbm [resolvable:$true] %s850_s22 }
  0x1f   :  { %896 = vpow2.f32 %v193_v18  ;;  %vm629_vm0 = vcmp.lt.s32.totalorder %v1268_v16, 16  ;;  %s1151_s24 = smov [#allocation12]   ;;  %s1152_s25 = smov [#allocation13]  }
  0x20   :  { %898 = vpow2.f32 %v195_v19 }
  0x22   :  { %v891_v20 = vpop.eup %890 }
  0x23   :  { %v738_v21 = vadd.f32 1.0, %v891_v20  ;;  %v893_v22 = vpop.eup %892 }
  0x24   :  { %v895_v23 = vpop.eup %894  ;;  %v221_v24 = vadd.f32 1.0, %v893_v22 }
  0x25   :  { %900 = vlog2.f32 %v738_v21  ;;  %v897_v25 = vpop.eup %896  ;;  %v222_v26 = vadd.f32 1.0, %v895_v23 }
  0x26   :  { %v899_v27 = vpop.eup %898  ;;  %v223_v28 = vadd.f32 1.0, %v897_v25  ;;  %902 = vlog2.f32 %v221_v24 }
  0x27   :  { %v224_v30 = vadd.f32 1.0, %v899_v27  ;;  %904 = vlog2.f32 %v222_v26 }
  0x28   :  { %906 = vlog2.f32 %v223_v28 }
  0x29   :  { %908 = vlog2.f32 %v224_v30 }
  0x2b   :  { %v901_v31 = vpop.eup %900 }
  0x2c   :  { %v740_v32 = vmul.f32 0.6931472, %v901_v31  ;;  %v903_v36 = vpop.eup %902 }
  0x2d   :  { %v905_v39 = vpop.eup %904  ;;  %v238_v42 = vmul.f32 0.6931472, %v903_v36 }
  0x2e   :  { %v1230_v34 = vadd.f32 %v740_v32, %v733_v29  ;;  %v907_v44 = vpop.eup %906  ;;  %v240_v47 = vmul.f32 0.6931472, %v905_v39 }
  0x2f   :  { %v909_v48 = vpop.eup %908  ;;  %v242_v51 = vmul.f32 0.6931472, %v907_v44  ;;  %v269_v52 = vadd.f32 %v238_v42, %v141_v35 }
  0x30   :  { %v742_v40 = vmul.f32 %v1230_v34, %v731_v33  ;;  %v757_v43 = vmul.f32 -2.0, %v1230_v34  ;;  %v244_v56 = vmul.f32 0.6931472, %v909_v48  ;;  %v270_v57 = vadd.f32 %v240_v47, %v142_v38  ;;  %v1288_v47 = vld [vmem:[#allocation8 + $0x78] sm:$0xff] }
  0x31   :  { %v271_v61 = vadd.f32 %v242_v51, %v143_v41  ;;  %v285_v62 = vmul.f32 %v269_v52, %v1239_v45  ;;  %v754_v22 = vsub.f32 -0.9189385, %v1230_v34 }
  0x32   :  { %v1242_v49 = vadd.f32 %v742_v40, %v730_v37  ;;  %v758_v53 = vmul.f32 1.442695, %v757_v43  ;;  %v272_v0 = vadd.f32 %v244_v56, %v144_v46  ;;  %v286_v1 = vmul.f32 %v270_v57, %v1244_v50 }
  0x33   :  { %v755_v2 = vmul.f32 %v742_v40, %v742_v40  ;;  %v287_v6 = vmul.f32 %v271_v61, %v1246_v55  ;;  %v1255_v7 = vadd.f32 %v285_v62, %v93_v54  ;;  %v525_v46 = vmul.f32 %v1239_v45, %v1239_v45 }
  0x34   :  { %v744_v58 = vmul.f32 %v1242_v49, %v1242_v49  ;;  %910 = vpow2.f32 %v758_v53  ;;  %v288_v8 = vmul.f32 %v272_v0, %v1250_v60  ;;  %v1258_v9 = vadd.f32 %v286_v1, %v94_v59 }
  0x35   :  { %v756_v10 = vmul.f32 0.5, %v755_v2  ;;  %912 = vlog2.f32 %v269_v52  ;;  %v1260_v12 = vadd.f32 %v287_v6, %v95_v63  ;;  %v317_v13 = vmul.f32 %v1255_v7, %v1255_v7  ;;  %v1299_v63 = vld [vmem:[#allocation8 + $0x70] sm:$0xff] }
  0x36   :  { %v746_v4 = vmul.f32 -79999.5, %v744_v58  ;;  %914 = vlog2.f32 %v270_v57  ;;  %v1264_v14 = vadd.f32 %v288_v8, %v96_v5  ;;  %v318_v15 = vmul.f32 %v1258_v9, %v1258_v9 }
  0x37   :  { %916 = vlog2.f32 %v271_v61  ;;  %v319_v17 = vmul.f32 %v1260_v12, %v1260_v12  ;;  %v349_v18 = vmul.f32 -79999.5, %v317_v13  ;;  %v1276_v36 = vmul.f32 -0.5, %v744_v58 }
  0x38   :  { %v747_v11 = vmul.f32 1.442695, %v746_v4  ;;  %v320_v20 = vmul.f32 %v1264_v14, %v1264_v14  ;;  %v350_v21 = vmul.f32 -79999.5, %v318_v15  ;;  %v1278_v40 = vmul.f32 -0.5, %v317_v13 }
  0x39   :  { %v351_v23 = vmul.f32 -79999.5, %v319_v17  ;;  %v365_v24 = vmul.f32 1.442695, %v349_v18  ;;  %v1280_v41 = vmul.f32 -0.5, %v318_v15  ;;  %v1282_v42 = vmul.f32 -0.5, %v319_v17 }
  0x3a   :  { %918 = vpow2.f32 %v747_v11  ;;  %v911_v19 = vpop.eup %910  ;;  %v352_v27 = vmul.f32 -79999.5, %v320_v20  ;;  %v367_v28 = vmul.f32 1.442695, %v350_v21  ;;  %v1284_v43 = vmul.f32 -0.5, %v320_v20  ;;  %v1304_v18 = vld [vmem:[#allocation8 + $0x68] sm:$0xff] }
  0x3b   :  { %920 = vlog2.f32 %v272_v0  ;;  %v760_v25 = vmul.f32 %v911_v19, %v756_v10  ;;  %v913_v26 = vpop.eup %912  ;;  %v369_v30 = vmul.f32 1.442695, %v351_v23  ;;  %v526_v52 = vmul.f32 %v1244_v50, %v1244_v50 }
  0x3c   :  { %v915_v29 = vpop.eup %914  ;;  %922 = vpow2.f32 %v365_v24  ;;  %v371_v32 = vmul.f32 1.442695, %v352_v27  ;;  %v478_v34 = vmul.f32 0.6931472, %v913_v26  ;;  %v527_v53 = vmul.f32 %v1246_v55, %v1246_v55  ;;  %v1309_v27 = vld [vmem:[#allocation8 + $0x58] sm:$0xff] }
  0x3d   :  { %v917_v31 = vpop.eup %916  ;;  %924 = vpow2.f32 %v367_v28  ;;  %v761_v33 = vsub.f32 %v754_v22, %v760_v25  ;;  %v480_v37 = vmul.f32 0.6931472, %v915_v29  ;;  %v528_v45 = vmul.f32 %v1250_v60, %v1250_v60  ;;  %v1307_v22 = vld [vmem:[#allocation8 + $0x60] sm:$0xff] }
  0x3e   :  { %926 = vpow2.f32 %v369_v30  ;;  %v482_v44 = vmul.f32 0.6931472, %v917_v31  ;;  %v509_v57 = vsub.f32 -0.9189385, %v478_v34  ;;  %v172_v62 = vand.u32 2147483647, %v1288_v47 }
  0x3f   :  { %928 = vpow2.f32 %v371_v32  ;;  %v763_v51 = vsel %vm629_vm0, %v761_v33, 0.0  ;;  %v510_v58 = vsub.f32 -0.9189385, %v480_v37  ;;  %v541_v2 = vmul.f32 0.5, %v525_v46  ;;  %v1312_v31 = vld [vmem:[#allocation8 + $0x50] sm:$0xff] }
  0x40   :  { %v919_v35 = vpop.eup %918  ;;  %v1302_v50 = vsel %vm768_vm1, %v763_v51, 0.0  ;;  %v511_v55 = vsub.f32 -0.9189385, %v482_v44  ;;  %v542_v6 = vmul.f32 0.5, %v526_v52  ;;  %v543_v8 = vmul.f32 0.5, %v527_v53 }
  0x41   :  { %v921_v38 = vpop.eup %920  ;;  %v749_v39 = vmul.f32 79.78846, %v919_v35  ;;  %v544_v15 = vmul.f32 0.5, %v528_v45  ;;  %v188_v17 = vsub.f32 0.0, %v172_v62  ;;  %v557_v20 = vsub.f32 %v509_v57, %v541_v2 }
  0x42   :  { %v923_v54 = vpop.eup %922  ;;  %v484_v56 = vmul.f32 0.6931472, %v921_v38  ;;  %v171_v21 = vand.u32 2147483647, %v1299_v63  ;;  %v558_v24 = vsub.f32 %v510_v58, %v542_v6  ;;  %v559_v25 = vsub.f32 %v511_v55, %v543_v8  ;;  %v1328_v6 = vld [vmem:[#allocation8 + $0x48] sm:$0xff] }
  0x43   :  { %v750_v48 = vadd.f32 0.19947115, %v749_v39  ;;  %v925_v59 = vpop.eup %924  ;;  %v397_v61 = vmul.f32 79.78846, %v923_v54  ;;  %v219_v26 = vmul.f32 1.442695, %v188_v17 }
  0x44   :  { %v927_v0 = vpop.eup %926  ;;  %v398_v1 = vmul.f32 79.78846, %v925_v59  ;;  %v512_v13 = vsub.f32 -0.9189385, %v484_v56  ;;  %v187_v29 = vsub.f32 0.0, %v171_v21  ;;  %v156_v33 = vmax.f32 %v1288_v47, 0.0 }
  0x45   :  { %930 = vlog2.f32 %v750_v48  ;;  %v929_v3 = vpop.eup %928  ;;  %v399_v4 = vmul.f32 79.78846, %v927_v0  ;;  %v413_v5 = vadd.f32 0.19947115, %v397_v61  ;;  %v170_v30 = vand.u32 2147483647, %v1304_v18 }
  0x46   :  { %v400_v10 = vmul.f32 79.78846, %v929_v3  ;;  %v414_v11 = vadd.f32 0.19947115, %v398_v1  ;;  %v560_v32 = vsub.f32 %v512_v13, %v544_v15  ;;  %v169_v35 = vand.u32 2147483647, %v1307_v22 }
  0x47   :  { %v415_v60 = vadd.f32 0.19947115, %v399_v4  ;;  %932 = vlog2.f32 %v413_v5  ;;  %v662_v37 = vsel %vm629_vm0, %v557_v20, 0.0  ;;  %v217_v38 = vmul.f32 1.442695, %v187_v29  ;;  %v1343_v21 = vld [vmem:[#allocation8 + $0x38] sm:$0xff] }
  0x48   :  { %v416_v19 = vadd.f32 0.19947115, %v400_v10  ;;  %934 = vlog2.f32 %v414_v11  ;;  %v186_v39 = vsub.f32 0.0, %v170_v30  ;;  %v663_v46 = vsel %vm629_vm0, %v558_v24, 0.0 }
  0x49   :  { %936 = vlog2.f32 %v415_v60  ;;  %v185_v48 = vsub.f32 0.0, %v169_v35  ;;  %v168_v51 = vand.u32 2147483647, %v1309_v27  ;;  %v167_v52 = vand.u32 2147483647, %v1312_v31  ;;  %v1350_v35 = vld [vmem:[#allocation8 + $0x30] sm:$0xff] }
  0x4a   :  { %938 = vlog2.f32 %v416_v19  ;;  %v664_v15 = vsel %vm629_vm0, %v559_v25, 0.0  ;;  %v166_v20 = vand.u32 2147483647, %v1328_v6 }
  0x4b   :  { %v931_v23 = vpop.eup %930  ;;  %940 = vpow2.f32 %v219_v26  ;;  %v213_v61 = vmul.f32 1.442695, %v185_v48  ;;  %v184_v45 = vsub.f32 0.0, %v168_v51  ;;  %v183_v55 = vsub.f32 0.0, %v167_v52 }
  0x4c   :  { %v752_v28 = vmul.f32 0.6931472, %v931_v23  ;;  %942 = vpow2.f32 %v217_v38  ;;  %v702_v23 = vadd.f32 %v663_v46, %v662_v37  ;;  %v182_v29 = vsub.f32 0.0, %v166_v20  ;;  %v1354_v37 = vld [vmem:[#allocation8 + $0x28] sm:$0xff] }
  0x4d   :  { %v933_v44 = vpop.eup %932  ;;  %v211_v5 = vmul.f32 1.442695, %v184_v45  ;;  %v209_v13 = vmul.f32 1.442695, %v183_v55  ;;  %v155_v38 = vmax.f32 %v1299_v63, 0.0 }
  0x4e   :  { %v753_v34 = vadd.f32 %v752_v28, %v1276_v36  ;;  %v935_v53 = vpop.eup %934  ;;  %v430_v56 = vmul.f32 0.6931472, %v933_v44  ;;  %v215_v36 = vmul.f32 1.442695, %v186_v39  ;;  %v665_v28 = vsel %vm629_vm0, %v560_v32, 0.0 }
  0x4f   :  { %v937_v57 = vpop.eup %936  ;;  %v432_v59 = vmul.f32 0.6931472, %v935_v53  ;;  %v164_v44 = vand.u32 2147483647, %v1343_v21  ;;  %v207_v16 = vmul.f32 1.442695, %v182_v29  ;;  %v703_v52 = vadd.f32 %v702_v23, %v664_v15 }
  0x50   :  { %v762_v54 = vsel %vm629_vm0, %v753_v34, 0.0  ;;  %v939_v62 = vpop.eup %938  ;;  %v434_v0 = vmul.f32 0.6931472, %v937_v57  ;;  %v461_v1 = vadd.f32 %v430_v56, %v1278_v40  ;;  %944 = vpow2.f32 %v215_v36  ;;  %v123_v15 = vld [vmem:[#allocation9 + $0x70] sm:$0xff] }
  0x51   :  { %v769_v58 = vsel %vm768_vm1, %v762_v54, 0.0  ;;  %v941_v2 = vpop.eup %940  ;;  %v436_v3 = vmul.f32 0.6931472, %v939_v62  ;;  %v462_v4 = vadd.f32 %v432_v59, %v1280_v41  ;;  %946 = vpow2.f32 %v213_v61  ;;  %v1338_v41 = vld [vmem:[#allocation8 + $0x40] sm:$0xff]  ;;  %v124_v62 = vld [vmem:[#allocation9 + $0x78] sm:$0xff]  ;;  %v107_v23 = vld [vmem:[#allocation6 + $0x70] sm:$0xff] }
  0x52   :  { %770 = vadd.xlane.f32.xlu1 %v769_v58  ;;  %v463_v8 = vadd.f32 %v434_v0, %v1282_v42  ;;  %v646_v10 = vsel %vm629_vm0, %v461_v1, 0.0  ;;  %v236_v11 = vadd.f32 1.0, %v941_v2  ;;  %948 = vpow2.f32 %v211_v5  ;;  %v943_v17 = vpop.eup %942  ;;  %v1359_v58 = vld [vmem:[#allocation8 + $0x20] sm:$0xff] }
  0x53   :  { %v464_v60 = vadd.f32 %v436_v3, %v1284_v43  ;;  %v647_v40 = vsel %vm629_vm0, %v462_v4, 0.0  ;;  %v235_v24 = vadd.f32 1.0, %v943_v17  ;;  %v165_v30 = vand.u32 2147483647, %v1338_v41 }
  0x54   :  { %v648_v42 = vsel %vm629_vm0, %v463_v8, 0.0  ;;  %v678_v19 = vadd.f32 %v647_v40, %v646_v10  ;;  %950 = vlog2.f32 %v236_v11  ;;  %v180_v53 = vsub.f32 0.0, %v164_v44  ;;  %v108_v10 = vld [vmem:[#allocation6 + $0x78] sm:$0xff] }
  0x55   :  { %v649_v43 = vsel %vm629_vm0, %v464_v60, 0.0  ;;  %952 = vpow2.f32 %v209_v13  ;;  %v181_v32 = vsub.f32 0.0, %v165_v30  ;;  %v163_v54 = vand.u32 2147483647, %v1350_v35 }
  0x56   :  { %v945_v25 = vpop.eup %944  ;;  %v679_v26 = vadd.f32 %v678_v19, %v648_v42  ;;  %954 = vlog2.f32 %v235_v24  ;;  %v162_v57 = vand.u32 2147483647, %v1354_v37  ;;  %v203_v61 = vmul.f32 1.442695, %v180_v53  ;;  %v122_v24 = vld [vmem:[#allocation9 + $0x68] sm:$0xff] }
  0x57   :  { %v947_v34 = vpop.eup %946  ;;  %v234_v39 = vadd.f32 1.0, %v945_v25  ;;  %v205_v36 = vmul.f32 1.442695, %v181_v32  ;;  %v179_v45 = vsub.f32 0.0, %v163_v54  ;;  %v154_v0 = vmax.f32 %v1304_v18, 0.0 }
  0x58   :  { %v680_v46 = vadd.f32 %v679_v26, %v649_v43  ;;  %v233_v48 = vadd.f32 1.0, %v947_v34  ;;  %v949_v51 = vpop.eup %948  ;;  %v178_v55 = vsub.f32 0.0, %v162_v57  ;;  %v161_v5 = vand.u32 2147483647, %v1359_v58 }
  0x59   :  { %956 = vlog2.f32 %v234_v39  ;;  %v232_v63 = vadd.f32 1.0, %v949_v51  ;;  %v201_v4 = vmul.f32 1.442695, %v179_v45  ;;  %v704_v8 = vadd.f32 %v703_v52, %v665_v28  ;;  %v105_v51 = vld [vmem:[#allocation6 + $0x60] sm:$0xff]  ;;  %v120_v52 = vld [vmem:[#allocation9 + $0x58] sm:$0xff] }
  0x5a   :  { %782 = vadd.xlane.f32.xlu1 %v1302_v50  ;;  %v951_v56 = vpop.eup %950  ;;  %693 = vadd.xlane.f32.xlu0 %v680_v46  ;;  %958 = vlog2.f32 %v233_v48  ;;  %v199_v13 = vmul.f32 1.442695, %v178_v55  ;;  %v153_v18 = vmax.f32 %v1307_v22, 0.0  ;;  %v177_v17 = vsub.f32 0.0, %v161_v5  ;;  %v121_v22 = vld [vmem:[#allocation9 + $0x60] sm:$0xff] }
  0x5b   :  { %v953_v59 = vpop.eup %952  ;;  %v268_v50 = vmul.f32 0.6931472, %v951_v56  ;;  %960 = vpow2.f32 %v207_v16 }
  0x5c   :  { %962 = vlog2.f32 %v232_v63  ;;  %v231_v1 = vadd.f32 1.0, %v953_v59  ;;  %v955_v2 = vpop.eup %954  ;;  %v197_v26 = vmul.f32 1.442695, %v177_v17  ;;  %v118_v17 = vld [vmem:[#allocation9 + $0x48] sm:$0xff] }
  0x5d   :  { %v284_v3 = vadd.f32 %v268_v50, %v156_v33  ;;  %964 = vpow2.f32 %v205_v36  ;;  %v266_v11 = vmul.f32 0.6931472, %v955_v2  ;;  %v152_v33 = vmax.f32 %v1309_v27, 0.0  ;;  %v104_v50 = vld [vmem:[#allocation6 + $0x58] sm:$0xff]  ;;  %v103_v2 = vld [vmem:[#allocation6 + $0x50] sm:$0xff] }
  0x5e   :  { %966 = vlog2.f32 %v231_v1  ;;  %v151_v27 = vmax.f32 %v1312_v31, 0.0 }
  0x5f   :  { %v957_v60 = vpop.eup %956  ;;  %v300_v40 = vmul.f32 %v284_v3, %v124_v62  ;;  %968 = vpow2.f32 %v203_v61  ;;  %v283_v19 = vadd.f32 %v266_v11, %v155_v38  ;;  %v106_v38 = vld [vmem:[#allocation6 + $0x68] sm:$0xff]  ;;  %v119_v61 = vld [vmem:[#allocation9 + $0x50] sm:$0xff] }
  0x60   :  { %v959_v42 = vpop.eup %958  ;;  %v264_v47 = vmul.f32 0.6931472, %v957_v60  ;;  %970 = vpow2.f32 %v201_v4 }
  0x61   :  { %v961_v20 = vpop.eup %960  ;;  %v316_v43 = vadd.f32 %v300_v40, %v108_v10  ;;  %v262_v25 = vmul.f32 0.6931472, %v959_v42  ;;  %972 = vpow2.f32 %v199_v13  ;;  %v299_v29 = vmul.f32 %v283_v19, %v123_v15 }
  0x62   :  { %v963_v28 = vpop.eup %962  ;;  %717 = vadd.xlane.f32.xlu0 %v704_v8  ;;  %v282_v30 = vadd.f32 %v264_v47, %v154_v0  ;;  %v230_v34 = vadd.f32 1.0, %v961_v20  ;;  %974 = vpow2.f32 %v197_v26  ;;  %v150_v10 = vmax.f32 %v1328_v6, 0.0  ;;  %v102_v6 = vld [vmem:[#allocation6 + $0x48] sm:$0xff]  ;;  %v117_v20 = vld [vmem:[#allocation9 + $0x40] sm:$0xff] }
  0x63   :  { %v965_v39 = vpop.eup %964  ;;  %795 = vmatpush.msra.mxu0 %v316_v43  ;;  %v281_v44 = vadd.f32 %v262_v25, %v153_v18  ;;  %v260_v46 = vmul.f32 0.6931472, %v963_v28  ;;  %v315_v16 = vadd.f32 %v299_v29, %v107_v23  ;;  %v149_v15 = vmax.f32 %v1338_v41, 0.0  ;;  %v101_v29 = vld [vmem:[#allocation6 + $0x40] sm:$0xff] }
  0x64   :  { %v967_v48 = vpop.eup %966  ;;  %v298_v32 = vmul.f32 %v282_v30, %v122_v24  ;;  %976 = vlog2.f32 %v230_v34  ;;  %v229_v53 = vadd.f32 1.0, %v965_v39  ;;  %v148_v47 = vmax.f32 %v1343_v21, 0.0  ;;  %v116_v30 = vld [vmem:[#allocation9 + $0x38] sm:$0xff] }
  0x65   :  { %v969_v54 = vpop.eup %968  ;;  %v297_v56 = vmul.f32 %v281_v44, %v121_v22  ;;  %v280_v63 = vadd.f32 %v260_v46, %v152_v33  ;;  %v258_v36 = vmul.f32 0.6931472, %v967_v48  ;;  %796 = vmatpush.msra.mxu0 %v315_v16  ;;  %v147_v43 = vmax.f32 %v1350_v35, 0.0  ;;  %v115_v44 = vld [vmem:[#allocation9 + $0x30] sm:$0xff]  ;;  %v100_v48 = vld [vmem:[#allocation6 + $0x38] sm:$0xff]  ;;  %v114_v16 = vld [vmem:[#allocation9 + $0x28] sm:$0xff] }
  0x66   :  { %v971_v57 = vpop.eup %970  ;;  %v314_v59 = vadd.f32 %v298_v32, %v106_v38  ;;  %978 = vlog2.f32 %v229_v53  ;;  %v228_v45 = vadd.f32 1.0, %v969_v54  ;;  %v146_v41 = vmax.f32 %v1354_v37, 0.0 }
  0x67   :  { %v973_v31 = vpop.eup %972  ;;  %v313_v62 = vadd.f32 %v297_v56, %v105_v51  ;;  %v296_v0 = vmul.f32 %v280_v63, %v120_v52  ;;  %v279_v1 = vadd.f32 %v258_v36, %v151_v27  ;;  %v227_v55 = vadd.f32 1.0, %v971_v57  ;;  %v99_v52 = vld [vmem:[#allocation6 + $0x30] sm:$0xff]  ;;  %v98_v56 = vld [vmem:[#allocation6 + $0x28] sm:$0xff]  ;;  %v113_v63 = vld [vmem:[#allocation9 + $0x20] sm:$0xff] }
  0x68   :  { %797 = vmatpush.msra.mxu0 %v314_v59  ;;  %980 = vlog2.f32 %v228_v45  ;;  %v226_v3 = vadd.f32 1.0, %v973_v31  ;;  %v975_v4 = vpop.eup %974  ;;  %v145_v34 = vmax.f32 %v1359_v58, 0.0 }
  0x69   :  { %v312_v5 = vadd.f32 %v296_v0, %v104_v50  ;;  %v295_v8 = vmul.f32 %v279_v1, %v119_v61  ;;  %982 = vlog2.f32 %v227_v55  ;;  %v225_v13 = vadd.f32 1.0, %v975_v4  ;;  %v97_v50 = vld [vmem:[#allocation6 + $0x20] sm:$0xff] }
  0x6a   :  { %v977_v11 = vpop.eup %976  ;;  %798 = vmatpush.msra.mxu0 %v313_v62  ;;  %984 = vlog2.f32 %v226_v3  ;;  %v794_v62 = vld [vmem:[#allocation2] sm:$0xff] }
  0x6b   :  { %v311_v60 = vadd.f32 %v295_v8, %v103_v2  ;;  %v256_v40 = vmul.f32 0.6931472, %v977_v11  ;;  %986 = vlog2.f32 %v225_v13 }
  0x6c   :  { %v979_v18 = vpop.eup %978  ;;  %799 = vmatpush.msra.mxu0 %v312_v5 }
  0x6d   :  { %v278_v42 = vadd.f32 %v256_v40, %v150_v10  ;;  %v254_v19 = vmul.f32 0.6931472, %v979_v18 }
  0x6e   :  { %v981_v33 = vpop.eup %980  ;;  %800 = vmatpush.msra.mxu0 %v311_v60 }
  0x6f   :  { %v983_v23 = vpop.eup %982  ;;  %v294_v24 = vmul.f32 %v278_v42, %v118_v17  ;;  %v277_v25 = vadd.f32 %v254_v19, %v149_v15  ;;  %v252_v26 = vmul.f32 0.6931472, %v981_v33 }
  0x70   :  { %v985_v28 = vpop.eup %984  ;;  %v250_v22 = vmul.f32 0.6931472, %v983_v23 }
  0x71   :  { %v310_v39 = vadd.f32 %v294_v24, %v102_v6  ;;  %v293_v21 = vmul.f32 %v277_v25, %v117_v20  ;;  %v276_v38 = vadd.f32 %v252_v26, %v148_v47  ;;  %v248_v46 = vmul.f32 0.6931472, %v985_v28  ;;  %v987_v27 = vpop.eup %986 }
  0x72   :  { %v275_v35 = vadd.f32 %v250_v22, %v147_v43  ;;  %v246_v53 = vmul.f32 0.6931472, %v987_v27  ;;  %v765_v24 = vperm.slane %v1242_v49, 0 }
  0x73   :  { %801 = vmatpush.msra.mxu0 %v310_v39  ;;  %v309_v32 = vadd.f32 %v293_v21, %v101_v29  ;;  %v292_v51 = vmul.f32 %v276_v38, %v116_v30  ;;  %v274_v37 = vadd.f32 %v248_v46, %v146_v41 }
  0x74   :  { %v291_v54 = vmul.f32 %v275_v35, %v115_v44  ;;  %v273_v57 = vadd.f32 %v246_v53, %v145_v34 }
  0x75   :  { %802 = vmatpush.msra.mxu0 %v309_v32  ;;  %v308_v58 = vadd.f32 %v292_v51, %v100_v48  ;;  %v290_v36 = vmul.f32 %v274_v37, %v114_v16 }
  0x76   :  { %v307_v59 = vadd.f32 %v291_v54, %v99_v52  ;;  %v289_v45 = vmul.f32 %v273_v57, %v113_v63 }
  0x77   :  { %803 = vmatpush.msra.mxu0 %v308_v58  ;;  %v306_v61 = vadd.f32 %v290_v36, %v98_v56 }
  0x78   :  { %v305_v31 = vadd.f32 %v289_v45, %v97_v50 }
  0x79   :  { %804 = vmatpush.msra.mxu0 %v307_v59 }
  0x7b   :  { %805 = vmatpush.msra.mxu0 %v306_v61 }
  0x7d   :  { %806 = vmatpush.msra.mxu0 %v305_v31 }
  0x7f   :  { %807 = vmatpush.msra.mxu0 %v1264_v14 }
  0x81   :  { %808 = vmatpush.msra.mxu0 %v1260_v12 }
  0x83   :  { %809 = vmatpush.msra.mxu0 %v1258_v9 }
  0x85   :  { %810 = vmatpush.msra.mxu0 %v1255_v7 }
  0x86   :  { %811 = vmatmul.f32.vlgmr.msra.gmra.mxu0 %v794_v62 }
  0xc5   :  { %v771_v0 = vpop.xlane.xlu1 %770 }
  0xc6   :  { %v772_v55 = vrot.slane %v771_v0, 4 }
  0xc8   :  { %v773_v8 = vadd.f32 %v772_v55, %v771_v0 }
  0xca   :  { %v774_v14 = vrot.slane %v773_v8, 2 }
  0xcc   :  { %v775_v7 = vadd.f32 %v774_v14, %v773_v8 }
  0xcd   :  { %v783_v1 = vpop.xlane.xlu1 %782  ;;  %v694_v2 = vpop.xlane.xlu0 %693 }
  0xce   :  { %v695_v3 = vrot.slane %v694_v2, 4  ;;  %v784_v4 = vrot.slane %v783_v1, 4  ;;  %v776_v47 = vrot.slane %v775_v7, 1 }
  0xd0   :  { %v696_v5 = vadd.f32 %v695_v3, %v694_v2  ;;  %v785_v11 = vadd.f32 %v784_v4, %v783_v1  ;;  %v777_v43 = vadd.f32 %v776_v47, %v775_v7 }
  0xd2   :  { %v697_v10 = vrot.slane %v696_v5, 2  ;;  %v786_v12 = vrot.slane %v785_v11, 2 }
  0xd4   :  { %v698_v13 = vadd.f32 %v697_v10, %v696_v5  ;;  %v787_v17 = vadd.f32 %v786_v12, %v785_v11 }
  0xd5   :  { %v718_v60 = vpop.xlane.xlu0 %717 }
  0xd6   :  { %v719_v40 = vrot.slane %v718_v60, 4  ;;  %v699_v9 = vrot.slane %v698_v13, 1  ;;  %v788_v6 = vrot.slane %v787_v17, 1 }
  0xd8   :  { %v720_v15 = vadd.f32 %v719_v40, %v718_v60  ;;  %v700_v18 = vadd.f32 %v699_v9, %v698_v13  ;;  %v789_v23 = vadd.f32 %v788_v6, %v787_v17 }
  0xda   :  { %v721_v42 = vrot.slane %v720_v15, 2  ;;  %873 = vpush %v700_v18 }
  0xdc   :  { %v722_v19 = vadd.f32 %v721_v42, %v720_v15 }
  0xde   :  { %v723_v33 = vrot.slane %v722_v19, 1 }
  0xe0   :  { %v724_v20 = vadd.f32 %v723_v33, %v722_v19 }
  0xe2   :  { %875 = vpush %v724_v20 }
  0xe3   :  { %877 = vpush %v777_v43 }
  0xe4   :  { %879 = vpush %v789_v23 }
 0x103   :  { %v812_v25 = vpop.f32.mrf.mxu0 }
 0x104   :  { %v815_v26 = vadd.f32 %v812_v25, %v765_v24 }
 0x106   :  { %816 = vst [vmem:[#allocation11] sm:$0xff] %v815_v26 }
 0x107   :  { %835 = dma.vmem_to_hbm [thread:$0]  %s831_s6, 128, %s833_s13, [#allocation4]  }
 0x10b   :  { %s874_s17 = spop %873 }
 0x113   :  { %s876_s18 = spop %875 }
 0x114   :  { %s878_s19 = spop %877 }
 0x115   :  { %s818_s23 = sadd.f32 %s878_s19, %s874_s17  ;;  %s880_s7 = spop %879 }
 0x116   :  { %s822_s1 = sadd.f32 %s880_s7, %s876_s18 }
 0x117   :  { %820 = sst [smem:[#allocation12]] %s818_s23 }
 0x118   :  { %844 = dma.smem_to_hbm %s1151_s24, 16, %s842_s16, [#allocation5]  }
 0x119   :  { %824 = sst [smem:[#allocation13]] %s822_s1 }
 0x11a   :  { %853 = dma.smem_to_hbm %s1152_s25, 16, %s851_s22, [#allocation14]  }
 0x11b   :  { %1138 = dma.done.wait [#allocation4], 128  }
 0x11c   :  { %1139 = vsyncadd [#allocation4], 4294967168 }
 0x11d   :  { %1140 = dma.done.wait [#allocation5], 16  }
 0x11e   :  { %1141 = vsyncadd [#allocation5], 4294967280 }
 0x11f   :  { %1142 = dma.done.wait [#allocation14], 16  }
 0x120   :  { %1143 = vsyncadd [#allocation14], 4294967280 }
 0x121   :  { %866 = sfence }
 0x122   :  { %867 = vsyncpa [#allocation3], 1 }
 0x123   :  { %868 = vsyncpa [#allocation7], 1 }
 0x124   :  { %869 = vsyncpa [#allocation10], 1 }
 0x125   :  { %870 = vsyncpa [#allocation4], 1 }
 0x126   :  { %871 = vsyncpa [#allocation5], 1 }
 0x127   :  { %872 = vsyncpa [#allocation14], 1 }

</bundles_post_ra>
